<compile_context>
chip_gen: v7x
topology: tpu7x:2x2x1
jax: 0.10.0
libtpu: 0.0.40
codegen_flags: <defaults>
</compile_context>

<pallas_src>
import functools

import jax
import jax.numpy as jnp
from jax.experimental import pallas as pl
from jax.experimental.pallas import tpu as pltpu


def _round_up(x, m):
    return (x + m - 1) // m * m


def _ffn_kernel(x_ref, w1_ref, b1_ref, w2_ref, b2_ref, g_ref, beta_ref,
                o_ref, acc_ref, *, d_real, compute_dtype):
    """Grid = (row_tiles, f_tiles); f (hidden-dim chunk) is the reduction axis."""
    f = pl.program_id(1)
    n_f = pl.num_programs(1)

    @pl.when(f == 0)
    def _():
        acc_ref[...] = jnp.zeros_like(acc_ref)

    # Residual path needs f32 x; matmul operands are bf16 (f32 accumulation).
    x32 = x_ref[...].astype(jnp.float32)

    # conv1 (k=1) chunk:  ReLU(x @ W1[:, f-chunk] + b1[f-chunk])
    h = jnp.dot(x32.astype(compute_dtype), w1_ref[...],
                preferred_element_type=jnp.float32)
    h = jnp.maximum(h + b1_ref[...].astype(jnp.float32), 0.0)

    # conv2 (k=1) partial:  accumulate h @ W2[f-chunk, :] into resident acc
    acc_ref[...] += jnp.dot(h.astype(compute_dtype), w2_ref[...],
                            preferred_element_type=jnp.float32)

    @pl.when(f == n_f - 1)
    def _():
        # bias + residual, then LayerNorm over the real d_model channels.
        z = acc_ref[...] + b2_ref[...].astype(jnp.float32) + x32
        inv_d = 1.0 / d_real
        # Padded channels of z are exactly zero (zero-padded W2 cols / b2 / x),
        # so plain sums are correct as long as we divide by d_real.
        s = jnp.sum(z, axis=-1, keepdims=True)
        ss = jnp.sum(z * z, axis=-1, keepdims=True)
        mean = s * inv_d
        var = jnp.maximum(ss * inv_d - mean * mean, 0.0)
        zn = (z - mean) * jax.lax.rsqrt(var + 1e-5)
        # gamma is zero on padded channels -> padded outputs stay zero.
        o_ref[...] = (zn * g_ref[...].astype(jnp.float32)
                      + beta_ref[...].astype(jnp.float32)).astype(o_ref.dtype)


def poswise_ffn(x, w1, b1, w2, b2, gamma, beta, *,
                tm=256, tf=512, compute_dtype=jnp.bfloat16):
    """x: [B, S, d_model] f32.  w1: [d_model, d_ff], w2: [d_ff, d_model]."""
    B, S, D = x.shape
    F = w1.shape[1]
    M = B * S

    # TPU-friendly padded sizes: lane dim multiple of 128, row tile mult of 8.
    Dp = _round_up(D, 128)
    tm = min(tm, _round_up(M, 8))
    Mp = _round_up(M, tm)
    tf = min(tf, _round_up(F, 128))
    Fp = _round_up(F, tf)

    x_flat = jnp.zeros((Mp, Dp), x.dtype).at[:M, :D].set(x.reshape(M, D))
    w1_p = jnp.zeros((Dp, Fp), compute_dtype).at[:D, :F].set(
        w1.astype(compute_dtype))
    w2_p = jnp.zeros((Fp, Dp), compute_dtype).at[:F, :D].set(
        w2.astype(compute_dtype))
    b1_p = jnp.zeros((1, Fp), jnp.float32).at[0, :F].set(b1.astype(jnp.float32))
    b2_p = jnp.zeros((1, Dp), jnp.float32).at[0, :D].set(b2.astype(jnp.float32))
    g_p = jnp.zeros((1, Dp), jnp.float32).at[0, :D].set(gamma.astype(jnp.float32))
    be_p = jnp.zeros((1, Dp), jnp.float32).at[0, :D].set(beta.astype(jnp.float32))

    grid = (Mp // tm, Fp // tf)

    # VMEM budget: double-buffered x/out/weight-chunk tiles + f32 accumulator.
    w_item = jnp.dtype(compute_dtype).itemsize
    vmem_bytes = (
        2 * tm * Dp * 4            # x tile (f32, double buffered)
        + 2 * tm * Dp * 4          # output tile
        + 2 * Dp * tf * w_item     # W1 chunk
        + 2 * tf * Dp * w_item     # W2 chunk
        + 2 * (tf + 3 * Dp) * 4    # b1 / b2 / gamma / beta
        + tm * Dp * 4              # accumulator scratch
    )
    vmem_limit = int(min(max(2 * vmem_bytes, 8 << 20), 64 << 20))

    cost = pl.CostEstimate(
        flops=4 * M * D * F,                 # two M x D x F matmuls
        transcendentals=M,                   # one rsqrt per row
        bytes_accessed=(Mp * Dp * 4          # x
                        + Dp * Fp * w_item   # W1
                        + Fp * Dp * w_item   # W2
                        + Mp * Dp * 4),      # out
    )

    kernel = functools.partial(_ffn_kernel, d_real=float(D),
                               compute_dtype=compute_dtype)

    out = pl.pallas_call(
        kernel,
        out_shape=jax.ShapeDtypeStruct((Mp, Dp), x.dtype),
        grid_spec=pltpu.PrefetchScalarGridSpec(
            num_scalar_prefetch=0,
            grid=grid,
            in_specs=[
                pl.BlockSpec((tm, Dp), lambda i, f: (i, 0)),   # x rows (resident over f)
                pl.BlockSpec((Dp, tf), lambda i, f: (0, f)),   # W1 chunk (streamed)
                pl.BlockSpec((1, tf), lambda i, f: (0, f)),    # b1 chunk
                pl.BlockSpec((tf, Dp), lambda i, f: (f, 0)),   # W2 chunk (streamed)
                pl.BlockSpec((1, Dp), lambda i, f: (0, 0)),    # b2
                pl.BlockSpec((1, Dp), lambda i, f: (0, 0)),    # gamma
                pl.BlockSpec((1, Dp), lambda i, f: (0, 0)),    # beta
            ],
            out_specs=pl.BlockSpec((tm, Dp), lambda i, f: (i, 0)),
            scratch_shapes=[pltpu.VMEM((tm, Dp), jnp.float32)],
        ),
        compiler_params=pltpu.CompilerParams(
            dimension_semantics=("parallel", "arbitrary"),
            vmem_limit_bytes=vmem_limit,
        ),
        cost_estimate=cost,
    )(x_flat, w1_p, b1_p, w2_p, b2_p, g_p, be_p)

    return out[:M, :D].reshape(B, S, D)


def reference_ffn(x, w1, b1, w2, b2, gamma, beta, matmul_dtype=jnp.float32):
    xc = x.astype(matmul_dtype)
    h = jnp.einsum("bsd,df->bsf", xc, w1.astype(matmul_dtype),
                   preferred_element_type=jnp.float32) + b1
    h = jnp.maximum(h, 0.0)
    y = jnp.einsum("bsf,fd->bsd", h.astype(matmul_dtype),
                   w2.astype(matmul_dtype),
                   preferred_element_type=jnp.float32) + b2
    z = y + x
    mean = jnp.mean(z, axis=-1, keepdims=True)
    var = jnp.mean((z - mean) ** 2, axis=-1, keepdims=True)
    return (z - mean) * jax.lax.rsqrt(var + 1e-5) * gamma + beta


if __name__ == "__main__":
    B, S = 2, 8
    d_model, d_ff = 32, 64

    key = jax.random.PRNGKey(0)
    kx, k1, kb1, k2, kb2 = jax.random.split(key, 5)

    x = jax.random.normal(kx, (B, S, d_model), dtype=jnp.float32)

    # Conv1d(k=1) weights, stored pre-transposed as [in_ch, out_ch].
    scale1 = 1.0 / jnp.sqrt(d_model)
    scale2 = 1.0 / jnp.sqrt(d_ff)
    w1 = jax.random.uniform(k1, (d_model, d_ff), jnp.float32, -scale1, scale1)
    b1 = jax.random.uniform(kb1, (d_ff,), jnp.float32, -scale1, scale1)
    w2 = jax.random.uniform(k2, (d_ff, d_model), jnp.float32, -scale2, scale2)
    b2 = jax.random.uniform(kb2, (d_model,), jnp.float32, -scale2, scale2)
    gamma = jnp.ones((d_model,), jnp.float32)   # LayerNorm default init
    beta = jnp.zeros((d_model,), jnp.float32)

    out = poswise_ffn(x, w1, b1, w2, b2, gamma, beta)
    out = jax.block_until_ready(out)
    assert out.shape == (B, S, d_model)

    # Same-precision (bf16 operands, f32 accumulation) reference: tight check.
    ref_bf16 = reference_ffn(x, w1, b1, w2, b2, gamma, beta, jnp.bfloat16)
    assert jnp.max(jnp.abs(out - ref_bf16)) < 2e-3

    # Full-f32 reference: loose sanity check on the bf16-MXU approximation.
    ref_f32 = reference_ffn(x, w1, b1, w2, b2, gamma, beta, jnp.float32)
    assert jnp.max(jnp.abs(out - ref_f32)) < 5e-2

    print("KERNEL_OK")
</pallas_src>

<mosaic_0001>
module attributes {stable_mosaic.version = 11 : i64} {
  func.func @_ffn_kernel(%arg0: i32, %arg1: i32, %arg2: memref<16x128xf32, #tpu.memory_space<vmem>>, %arg3: memref<128x128xbf16, #tpu.memory_space<vmem>>, %arg4: memref<1x128xf32, #tpu.memory_space<vmem>>, %arg5: memref<128x128xbf16, #tpu.memory_space<vmem>>, %arg6: memref<1x128xf32, #tpu.memory_space<vmem>>, %arg7: memref<1x128xf32, #tpu.memory_space<vmem>>, %arg8: memref<1x128xf32, #tpu.memory_space<vmem>>, %arg9: memref<16x128xf32, #tpu.memory_space<vmem>>, %arg10: memref<16x128xf32, #tpu.memory_space<vmem>>) attributes {dimension_semantics = [#tpu.dimension_semantics<parallel>, #tpu.dimension_semantics<arbitrary>], iteration_bounds = array<i64: 1, 1>, scalar_prefetch = 0 : i64, scratch_operands = 1 : i64, tpu.core_type = #tpu.core_type<tc>, window_params = [{transform_indices = @transform_0, window_bounds = array<i64: 16, 128>}, {transform_indices = @transform_1, window_bounds = array<i64: 128, 128>}, {transform_indices = @transform_2, window_bounds = array<i64: 1, 128>}, {transform_indices = @transform_3, window_bounds = array<i64: 128, 128>}, {pipeline_mode = #tpu.pipeline_mode<synchronous>, transform_indices = @transform_4, window_bounds = array<i64: 1, 128>}, {pipeline_mode = #tpu.pipeline_mode<synchronous>, transform_indices = @transform_5, window_bounds = array<i64: 1, 128>}, {pipeline_mode = #tpu.pipeline_mode<synchronous>, transform_indices = @transform_6, window_bounds = array<i64: 1, 128>}, {transform_indices = @transform_7, window_bounds = array<i64: 16, 128>}]} {
    %c0_i32 = arith.constant 0 : i32
    %0 = arith.cmpi eq, %arg1, %c0_i32 : i32
    %1 = arith.extui %0 : i1 to i32
    %c0_i32_0 = arith.constant 0 : i32
    %2 = arith.cmpi ne, %1, %c0_i32_0 : i32
    scf.if %2 {
      %cst_16 = arith.constant 0.000000e+00 : f32
      %21 = vector.broadcast %cst_16 : f32 to vector<16x128xf32>
      %c0_17 = arith.constant 0 : index
      %c0_18 = arith.constant 0 : index
      %22 = vector.load %arg10[%c0_17, %c0_18] : memref<16x128xf32, #tpu.memory_space<vmem>>, vector<16x128xf32>
      tpu.vector_store %arg10[%c0_17, %c0_18], %21 {strides = array<i32>} : memref<16x128xf32, #tpu.memory_space<vmem>>, vector<16x128xf32>,
    } else {
    }
    %c0 = arith.constant 0 : index
    %c0_1 = arith.constant 0 : index
    %3 = vector.load %arg2[%c0, %c0_1] : memref<16x128xf32, #tpu.memory_space<vmem>>, vector<16x128xf32>
    %4 = arith.truncf %3 : vector<16x128xf32> to vector<16x128xbf16>
    %c0_2 = arith.constant 0 : index
    %c0_3 = arith.constant 0 : index
    %5 = vector.load %arg3[%c0_2, %c0_3] : memref<128x128xbf16, #tpu.memory_space<vmem>>, vector<128x128xbf16>
    %cst = arith.constant dense<0.000000e+00> : vector<16x128xf32>
    %6 = tpu.matmul %4, %5, %cst {dimension_numbers = #tpu.dot_dimension_numbers<[1], [0], [0], [1], [0, 0, 1, 1], [], []>} : vector<16x128xbf16>, vector<128x128xbf16>, vector<16x128xf32> -> vector<16x128xf32>
    %c0_4 = arith.constant 0 : index
    %c0_5 = arith.constant 0 : index
    %7 = vector.load %arg4[%c0_4, %c0_5] : memref<1x128xf32, #tpu.memory_space<vmem>>, vector<1x128xf32>
    %8 = vector.broadcast %7 : vector<1x128xf32> to vector<16x128xf32>
    %9 = arith.addf %6, %8 : vector<16x128xf32>
    %cst_6 = arith.constant 0.000000e+00 : f32
    %10 = vector.broadcast %cst_6 : f32 to vector<16x128xf32>
    %11 = arith.maximumf %9, %10 : vector<16x128xf32>
    %c0_7 = arith.constant 0 : index
    %c0_8 = arith.constant 0 : index
    %12 = vector.load %arg10[%c0_7, %c0_8] : memref<16x128xf32, #tpu.memory_space<vmem>>, vector<16x128xf32>
    %13 = arith.truncf %11 : vector<16x128xf32> to vector<16x128xbf16>
    %c0_9 = arith.constant 0 : index
    %c0_10 = arith.constant 0 : index
    %14 = vector.load %arg5[%c0_9, %c0_10] : memref<128x128xbf16, #tpu.memory_space<vmem>>, vector<128x128xbf16>
    %cst_11 = arith.constant dense<0.000000e+00> : vector<16x128xf32>
    %15 = tpu.matmul %13, %14, %cst_11 {dimension_numbers = #tpu.dot_dimension_numbers<[1], [0], [0], [1], [0, 0, 1, 1], [], []>} : vector<16x128xbf16>, vector<128x128xbf16>, vector<16x128xf32> -> vector<16x128xf32>
    %16 = arith.addf %12, %15 : vector<16x128xf32>
    %c0_12 = arith.constant 0 : index
    %c0_13 = arith.constant 0 : index
    %17 = vector.load %arg10[%c0_12, %c0_13] : memref<16x128xf32, #tpu.memory_space<vmem>>, vector<16x128xf32>
    tpu.vector_store %arg10[%c0_12, %c0_13], %16 {strides = array<i32>} : memref<16x128xf32, #tpu.memory_space<vmem>>, vector<16x128xf32>,
    %c0_i32_14 = arith.constant 0 : i32
    %18 = arith.cmpi eq, %arg1, %c0_i32_14 : i32
    %19 = arith.extui %18 : i1 to i32
    %c0_i32_15 = arith.constant 0 : i32
    %20 = arith.cmpi ne, %19, %c0_i32_15 : i32
    scf.if %20 {
      %c0_16 = arith.constant 0 : index
      %c0_17 = arith.constant 0 : index
      %21 = vector.load %arg10[%c0_16, %c0_17] : memref<16x128xf32, #tpu.memory_space<vmem>>, vector<16x128xf32>
      %c0_18 = arith.constant 0 : index
      %c0_19 = arith.constant 0 : index
      %22 = vector.load %arg6[%c0_18, %c0_19] : memref<1x128xf32, #tpu.memory_space<vmem>>, vector<1x128xf32>
      %23 = vector.broadcast %22 : vector<1x128xf32> to vector<16x128xf32>
      %24 = arith.addf %21, %23 : vector<16x128xf32>
      %25 = arith.addf %24, %3 : vector<16x128xf32>
      %cst_20 = arith.constant dense<0.000000e+00> : vector<16xf32>
      %26 = vector.multi_reduction <add>, %25, %cst_20 [1] : vector<16x128xf32> to vector<16xf32>
      %27 = vector.shape_cast %26 : vector<16xf32> to vector<16x1xf32>
      %28 = arith.mulf %25, %25 : vector<16x128xf32>
      %cst_21 = arith.constant dense<0.000000e+00> : vector<16xf32>
      %29 = vector.multi_reduction <add>, %28, %cst_21 [1] : vector<16x128xf32> to vector<16xf32>
      %30 = vector.shape_cast %29 : vector<16xf32> to vector<16x1xf32>
      %cst_22 = arith.constant 3.125000e-02 : f32
      %31 = vector.broadcast %cst_22 : f32 to vector<16x1xf32>
      %32 = arith.mulf %27, %31 : vector<16x1xf32>
      %cst_23 = arith.constant 3.125000e-02 : f32
      %33 = vector.broadcast %cst_23 : f32 to vector<16x1xf32>
      %34 = arith.mulf %30, %33 : vector<16x1xf32>
      %35 = arith.mulf %32, %32 : vector<16x1xf32>
      %36 = arith.subf %34, %35 : vector<16x1xf32>
      %cst_24 = arith.constant 0.000000e+00 : f32
      %37 = vector.broadcast %cst_24 : f32 to vector<16x1xf32>
      %38 = arith.maximumf %36, %37 : vector<16x1xf32>
      %39 = vector.broadcast %32 : vector<16x1xf32> to vector<16x128xf32>
      %40 = arith.subf %25, %39 : vector<16x128xf32>
      %cst_25 = arith.constant 9.99999974E-6 : f32
      %41 = vector.broadcast %cst_25 : f32 to vector<16x1xf32>
      %42 = arith.addf %38, %41 : vector<16x1xf32>
      %43 = math.rsqrt %42 : vector<16x1xf32>
      %44 = vector.broadcast %43 : vector<16x1xf32> to vector<16x128xf32>
      %45 = arith.mulf %40, %44 : vector<16x128xf32>
      %c0_26 = arith.constant 0 : index
      %c0_27 = arith.constant 0 : index
      %46 = vector.load %arg7[%c0_26, %c0_27] : memref<1x128xf32, #tpu.memory_space<vmem>>, vector<1x128xf32>
      %47 = vector.broadcast %46 : vector<1x128xf32> to vector<16x128xf32>
      %48 = arith.mulf %45, %47 : vector<16x128xf32>
      %c0_28 = arith.constant 0 : index
      %c0_29 = arith.constant 0 : index
      %49 = vector.load %arg8[%c0_28, %c0_29] : memref<1x128xf32, #tpu.memory_space<vmem>>, vector<1x128xf32>
      %50 = vector.broadcast %49 : vector<1x128xf32> to vector<16x128xf32>
      %51 = arith.addf %48, %50 : vector<16x128xf32>
      %c0_30 = arith.constant 0 : index
      %c0_31 = arith.constant 0 : index
      %52 = vector.load %arg9[%c0_30, %c0_31] : memref<16x128xf32, #tpu.memory_space<vmem>>, vector<16x128xf32>
      tpu.vector_store %arg9[%c0_30, %c0_31], %51 {strides = array<i32>} : memref<16x128xf32, #tpu.memory_space<vmem>>, vector<16x128xf32>,
    } else {
    }
    return
  }
  func.func @transform_0(%arg0: i32, %arg1: i32) -> (i32, i32) {
    %c0_i32 = arith.constant 0 : i32
    %c0_i32_0 = arith.constant 0 : i32
    return %arg0, %c0_i32 : i32, i32
  }
  func.func @transform_1(%arg0: i32, %arg1: i32) -> (i32, i32) {
    %c0_i32 = arith.constant 0 : i32
    %c0_i32_0 = arith.constant 0 : i32
    return %c0_i32, %arg1 : i32, i32
  }
  func.func @transform_2(%arg0: i32, %arg1: i32) -> (i32, i32) {
    %c0_i32 = arith.constant 0 : i32
    %c0_i32_0 = arith.constant 0 : i32
    return %c0_i32, %arg1 : i32, i32
  }
  func.func @transform_3(%arg0: i32, %arg1: i32) -> (i32, i32) {
    %c0_i32 = arith.constant 0 : i32
    %c0_i32_0 = arith.constant 0 : i32
    return %arg1, %c0_i32 : i32, i32
  }
  func.func @transform_4(%arg0: i32, %arg1: i32) -> (i32, i32) {
    %c0_i32 = arith.constant 0 : i32
    %c0_i32_0 = arith.constant 0 : i32
    %c0_i32_1 = arith.constant 0 : i32
    return %c0_i32, %c0_i32_0 : i32, i32
  }
  func.func @transform_5(%arg0: i32, %arg1: i32) -> (i32, i32) {
    %c0_i32 = arith.constant 0 : i32
    %c0_i32_0 = arith.constant 0 : i32
    %c0_i32_1 = arith.constant 0 : i32
    return %c0_i32, %c0_i32_0 : i32, i32
  }
  func.func @transform_6(%arg0: i32, %arg1: i32) -> (i32, i32) {
    %c0_i32 = arith.constant 0 : i32
    %c0_i32_0 = arith.constant 0 : i32
    %c0_i32_1 = arith.constant 0 : i32
    return %c0_i32, %c0_i32_0 : i32, i32
  }
  func.func @transform_7(%arg0: i32, %arg1: i32) -> (i32, i32) {
    %c0_i32 = arith.constant 0 : i32
    %c0_i32_0 = arith.constant 0 : i32
    return %arg0, %c0_i32 : i32, i32
  }
}

</mosaic_0001>

<bundles_post_ra>
// kernel: tpu_custom_call.1
= control target key start
LH: loop header
LB: loop body
LE: loop exit
PB: predicated region body
PF: predicated region fallthrough
CT: control target
= control target key end

     0   :  { %12 = vsyncpa [#allocation4], 0  ;;  %s710_s0 = inlined_call_operand.hbm [shape: f32[16,128], index: 0, kind: input, shape index: {}]   ;;  %s711_s1 = inlined_call_operand.hbm [shape: bf16[128,128], index: 1, kind: input, shape index: {}]   ;;  %s712_s2 = inlined_call_operand.vmem [shape: f32[1,128], index: 2, kind: input, shape index: {}]   ;;  %s713_s3 = inlined_call_operand.hbm [shape: bf16[128,128], index: 3, kind: input, shape index: {}]   ;;  %s714_s4 = inlined_call_operand.vmem [shape: f32[1,128], index: 4, kind: input, shape index: {}]   ;;  %s715_s5 = inlined_call_operand.vmem [shape: f32[1,128], index: 5, kind: input, shape index: {}]   ;;  %s716_s6 = inlined_call_operand.vmem [shape: f32[1,128], index: 6, kind: input, shape index: {}]   ;;  %s717_s7 = inlined_call_operand.hbm [shape: f32[16,128], index: 7, kind: output, shape index: {}]  }
   0x1   :  { %13 = vsyncpa [#allocation7], 0 }
   0x2   :  { %14 = vsyncpa [#allocation5], 0  ;;  %s588_s24 = smov [#allocation6]   ;;  %s494_s28 = scalar_lea.hbm %s711_s1, 1024 }
   0x3   :  { %s32_s25 = sshll.u32 %s588_s24, 4  ;;  %p495_p0 = scmp.ne.s32.totalorder %s711_s1, %s494_s28  ;;  %s33_s25 = int_to_ptr.vmem [resolvable:$true] %s32_s25 }
   0x4   :  { %p498_p1 = scmp.lt.u32.totalorder %s494_s28, %s711_s1 }
   0x6   :  { %p500_p2 = pnand %p498_p1, %p495_p0 }
   0x8   :  { %503 = shalt.err (!%p500_p2)
}
   0x9   :  { %s504_s10 = scalar_lea.vmem %s33_s25, 1024  ;;  %p509_p4 = scmp.lt.s32.totalorder %s33_s25, %s33_s25 }
   0xa   :  { %p505_p3 = scmp.ne.s32.totalorder %s33_s25, %s504_s10  ;;  %p510_p5 = scmp.lt.s32.totalorder %s504_s10, %s504_s10 }
   0xc   :  { %p511_p6 = por %p510_p5, %p509_p4 }
   0xe   :  { %p512_p7 = pnand %p511_p6, %p505_p3 }
  0x10   :  { %515 = shalt.err (!%p512_p7)
}
  0x11   :  { %s589_s11 = smov 64   ;;  %s590_s12 = smov 4  }
  0x12   :  { %38 = dma.hbm_to_vmem [thread:$0]  %s711_s1, 1024, %s33_s25, [#allocation7], %s589_s11, %s589_s11, %s590_s12  }
  0x13   :  { %s591_s15 = smov [#allocation3]   ;;  %s516_s19 = scalar_lea.hbm %s710_s0, 256 }
  0x14   :  { %s20_s16 = sshll.u32 %s591_s15, 4  ;;  %p517_p8 = scmp.ne.s32.totalorder %s710_s0, %s516_s19  ;;  %s21_s16 = int_to_ptr.vmem [resolvable:$true] %s20_s16 }
  0x15   :  { %p520_p9 = scmp.lt.u32.totalorder %s516_s19, %s710_s0 }
  0x17   :  { %p522_p10 = pnand %p520_p9, %p517_p8 }
  0x19   :  { %525 = shalt.err (!%p522_p10)
}
  0x1a   :  { %s526_s24 = scalar_lea.vmem %s21_s16, 256  ;;  %p531_p12 = scmp.lt.s32.totalorder %s21_s16, %s21_s16 }
  0x1b   :  { %p527_p11 = scmp.ne.s32.totalorder %s21_s16, %s526_s24  ;;  %p532_p13 = scmp.lt.s32.totalorder %s526_s24, %s526_s24 }
  0x1d   :  { %p533_p0 = por %p532_p13, %p531_p12 }
  0x1f   :  { %p534_p1 = pnand %p533_p0, %p527_p11 }
  0x21   :  { %537 = shalt.err (!%p534_p1)
}
  0x22   :  { %s592_s1 = smov 128   ;;  %s593_s25 = smov 8  }
  0x23   :  { %26 = dma.hbm_to_vmem [thread:$0]  %s710_s0, 256, %s21_s16, [#allocation4], %s592_s1, %s592_s1, %s593_s25  }
  0x24   :  { %s594_s28 = smov [#allocation8]   ;;  %s538_s9 = scalar_lea.hbm %s713_s3, 1024 }
  0x25   :  { %s46_s29 = sshll.u32 %s594_s28, 4  ;;  %p539_p2 = scmp.ne.s32.totalorder %s713_s3, %s538_s9  ;;  %s47_s29 = int_to_ptr.vmem [resolvable:$true] %s46_s29 }
  0x26   :  { %p542_p3 = scmp.lt.u32.totalorder %s538_s9, %s713_s3 }
  0x28   :  { %p544_p4 = pnand %p542_p3, %p539_p2 }
  0x2a   :  { %547 = shalt.err (!%p544_p4)
}
  0x2b   :  { %s548_s17 = scalar_lea.vmem %s47_s29, 1024  ;;  %p553_p6 = scmp.lt.s32.totalorder %s47_s29, %s47_s29 }
  0x2c   :  { %p549_p5 = scmp.ne.s32.totalorder %s47_s29, %s548_s17  ;;  %p554_p7 = scmp.lt.s32.totalorder %s548_s17, %s548_s17 }
  0x2e   :  { %p555_p8 = por %p554_p7, %p553_p6 }
  0x30   :  { %p556_p9 = pnand %p555_p8, %p549_p5 }
  0x32   :  { %559 = shalt.err (!%p556_p9)
}
  0x33   :  { %52 = dma.hbm_to_vmem [thread:$0]  %s713_s3, 1024, %s47_s29, [#allocation7], %s589_s11, %s589_s11, %s590_s12  }
  0x34   :  { %582 = dma.done.wait [#allocation4], 256  }
  0x35   :  { %583 = vsyncadd [#allocation4], 4294967040 }
  0x36   :  { %584 = dma.done.wait [#allocation7], 2048  }
  0x37   :  { %585 = vsyncadd [#allocation7], 4294965248  ;;  %v595_v0 = vmov 0.0   ;;  %vm596_vm0 = vmmov 0   ;;  %v474_v1 = vld [vmem:[#allocation6] sm:$0xff]   ;;  %v475_v2 = vld [vmem:[#allocation6 + $0x8] sm:$0xff]  }
  0x38   :  { %424 = vmatprep.subr.bf16.mxu0 %v595_v0  ;;  %440 = vmatprep.mubr.msk.bf16.mxu0 %vm596_vm0, %v595_v0  ;;  %v476_v3 = vld [vmem:[#allocation6 + $0x10] sm:$0xff]   ;;  %v482_v4 = vld [vmem:[#allocation8] sm:$0xff]   ;;  %v477_v5 = vld [vmem:[#allocation6 + $0x18] sm:$0xff]   ;;  %s597_s21 = smov [#allocation9]  }
  0x39   :  { %444 = vmatprep.subr.bf16.mxu1 %v595_v0  ;;  %460 = vmatprep.mubr.msk.bf16.mxu1 %vm596_vm0, %v595_v0  ;;  %v483_v6 = vld [vmem:[#allocation8 + $0x8] sm:$0xff]   ;;  %v478_v7 = vld [vmem:[#allocation6 + $0x20] sm:$0xff]   ;;  %v484_v8 = vld [vmem:[#allocation8 + $0x10] sm:$0xff]   ;;  %s373_s22 = sshll.u32 %s597_s21, 4  ;;  %s374_s22 = int_to_ptr.vmem [resolvable:$true] %s373_s22 }
  0x3a   :  { %425 = vmatpush3.bf16.msra.mxu0 %v474_v1  ;;  %445 = vmatpush3.bf16.msra.mxu1 %v482_v4  ;;  %v479_v9 = vld [vmem:[#allocation6 + $0x28] sm:$0xff]   ;;  %v485_v10 = vld [vmem:[#allocation8 + $0x18] sm:$0xff]   ;;  %v480_v11 = vld [vmem:[#allocation6 + $0x30] sm:$0xff]   ;;  %s560_s23 = scalar_lea.vmem %s374_s22, 256  ;;  %p565_p11 = scmp.lt.s32.totalorder %s374_s22, %s374_s22 }
  0x3b   :  { %426 = vmatprep.subr.bf16.mxu0 %v595_v0  ;;  %446 = vmatprep.subr.bf16.mxu1 %v595_v0  ;;  %v486_v12 = vld [vmem:[#allocation8 + $0x20] sm:$0xff]   ;;  %v481_v13 = vld [vmem:[#allocation6 + $0x38] sm:$0xff]   ;;  %v75_v14 = vld [vmem:[#allocation3] sm:$0xff]  ;;  %p561_p10 = scmp.ne.s32.totalorder %s374_s22, %s560_s23  ;;  %p566_p12 = scmp.lt.s32.totalorder %s560_s23, %s560_s23 }
  0x3c   :  { %v76_v15 = vld [vmem:[#allocation3 + $0x8] sm:$0xff]  ;;  %v487_v16 = vld [vmem:[#allocation8 + $0x28] sm:$0xff]   ;;  %v488_v18 = vld [vmem:[#allocation8 + $0x30] sm:$0xff]  }
  0x3d   :  { %v77_v17 = vpack.c.bf16 %v76_v15, %v75_v14  ;;  %v489_v19 = vld [vmem:[#allocation8 + $0x38] sm:$0xff]   ;;  %v386_v20 = vld [vmem:[%s712_s2] ss:$0 sm:$0xff]  ;;  %p567_p13 = por %p566_p12, %p565_p11 }
  0x3e   :  { %427 = vmatpush3.bf16.msra.mxu0 %v475_v2  ;;  %447 = vmatpush3.bf16.msra.mxu1 %v483_v6  ;;  %v403_v30 = vld [vmem:[%s714_s4] ss:$0 sm:$0xff] }
  0x3f   :  { %428 = vmatprep.subr.bf16.mxu0 %v595_v0  ;;  %448 = vmatprep.subr.bf16.mxu1 %v595_v0  ;;  %v404_v59 = vld [vmem:[%s715_s5] ss:$0 sm:$0xff]  ;;  %p568_p0 = pnand %p567_p13, %p561_p10 }
  0x40   :  { %v405_v61 = vld [vmem:[%s716_s6] ss:$0 sm:$0xff] }
  0x42   :  { %429 = vmatpush3.bf16.msra.mxu0 %v476_v3  ;;  %449 = vmatpush3.bf16.msra.mxu1 %v484_v8 }
  0x43   :  { %430 = vmatprep.subr.bf16.mxu0 %v595_v0  ;;  %450 = vmatprep.subr.bf16.mxu1 %v595_v0 }
  0x46   :  { %431 = vmatpush3.bf16.msra.mxu0 %v477_v5  ;;  %451 = vmatpush3.bf16.msra.mxu1 %v485_v10 }
  0x47   :  { %432 = vmatprep.subr.bf16.mxu0 %v595_v0  ;;  %452 = vmatprep.subr.bf16.mxu1 %v595_v0 }
  0x4a   :  { %433 = vmatpush3.bf16.msra.mxu0 %v478_v7  ;;  %453 = vmatpush3.bf16.msra.mxu1 %v486_v12 }
  0x4b   :  { %434 = vmatprep.subr.bf16.mxu0 %v595_v0  ;;  %454 = vmatprep.subr.bf16.mxu1 %v595_v0 }
  0x4e   :  { %435 = vmatpush3.bf16.msra.mxu0 %v479_v9  ;;  %455 = vmatpush3.bf16.msra.mxu1 %v487_v16 }
  0x4f   :  { %436 = vmatprep.subr.bf16.mxu0 %v595_v0  ;;  %456 = vmatprep.subr.bf16.mxu1 %v595_v0 }
  0x52   :  { %437 = vmatpush3.bf16.msra.mxu0 %v480_v11  ;;  %457 = vmatpush3.bf16.msra.mxu1 %v488_v18 }
  0x53   :  { %438 = vmatprep.subr.bf16.mxu0 %v595_v0  ;;  %458 = vmatprep.subr.bf16.mxu1 %v595_v0 }
  0x56   :  { %439 = vmatpush3.bf16.msra.mxu0 %v481_v13  ;;  %459 = vmatpush3.bf16.msra.mxu1 %v489_v19 }
  0x59   :  { %441 = vmatmul.mubr.bf16.vlgmr.msra.gmra.mrb[0].mxu0 %v77_v17 }
 0x12c   :  { %v183_v21 = vpop.f32.mrb[0].mxu0 }
 0x12d   :  { %v184_v22 = vadd.f32 %v386_v20, %v183_v21  ;;  %v442_v23 = vpop.f32.mrb[1].mxu0 }
 0x12e   :  { %v186_v24 = vpop.f32.mrb[2].mxu0 }
 0x12f   :  { %v187_v25 = vadd.f32 %v386_v20, %v186_v24  ;;  %v443_v26 = vpop.f32.mrb[3].mxu0  ;;  %v190_v27 = vmax.f32 %v184_v22, 0.0 }
 0x131   :  { %v191_v28 = vmax.f32 %v187_v25, 0.0 }
 0x133   :  { %v194_v29 = vpack.c.bf16 %v191_v28, %v190_v27 }
 0x135   :  { %461 = vmatmul.mubr.bf16.vlgmr.msra.gmra.mrb[0].mxu1 %v194_v29 }
 0x208   :  { %v293_v31 = vpop.f32.mrb[0].mxu1 }
 0x209   :  { %v316_v32 = vadd.f32 %v403_v30, %v293_v31  ;;  %v462_v33 = vpop.f32.mrb[1].mxu1 }
 0x20a   :  { %v296_v34 = vpop.f32.mrb[2].mxu1 }
 0x20b   :  { %v318_v35 = vadd.f32 %v316_v32, %v75_v14  ;;  %v317_v36 = vadd.f32 %v403_v30, %v296_v34  ;;  %v463_v37 = vpop.f32.mrb[3].mxu1 }
 0x20d   :  { %v319_v38 = vadd.f32 %v317_v36, %v76_v15  ;;  %320 = vadd.xlane.f32.xlu0 %v318_v35  ;;  %v324_v39 = vmul.f32 %v318_v35, %v318_v35 }
 0x20f   :  { %326 = vadd.xlane.f32.xlu1 %v324_v39  ;;  %v325_v40 = vmul.f32 %v319_v38, %v319_v38 }
 0x211   :  { %322 = vadd.xlane.f32.xlu0 %v319_v38 }
 0x213   :  { %328 = vadd.xlane.f32.xlu1 %v325_v40 }
 0x29a   :  { %v321_v41 = vpop.xlane.xlu0 %320 }
 0x29b   :  { %v330_v42 = vmul.f32 0.03125, %v321_v41 }
 0x29c   :  { %v327_v43 = vpop.xlane.xlu1 %326 }
 0x29d   :  { %v334_v44 = vmul.f32 %v330_v42, %v330_v42  ;;  %v332_v45 = vmul.f32 0.03125, %v327_v43  ;;  %v340_v57 = vsub.f32 %v318_v35, %v330_v42 }
 0x29e   :  { %v323_v46 = vpop.xlane.xlu0 %322 }
 0x29f   :  { %v336_v47 = vsub.f32 %v332_v45, %v334_v44  ;;  %v331_v48 = vmul.f32 0.03125, %v323_v46 }
 0x2a0   :  { %v329_v49 = vpop.xlane.xlu1 %328 }
 0x2a1   :  { %v338_v50 = vmax.f32 %v336_v47, 0.0  ;;  %v335_v51 = vmul.f32 %v331_v48, %v331_v48  ;;  %v333_v52 = vmul.f32 0.03125, %v329_v49  ;;  %v341_v62 = vsub.f32 %v319_v38, %v331_v48 }
 0x2a3   :  { %v342_v53 = vadd.f32 1e-05, %v338_v50  ;;  %v337_v54 = vsub.f32 %v333_v52, %v335_v51 }
 0x2a5   :  { %490 = vrsqrt.f32 %v342_v53  ;;  %v339_v55 = vmax.f32 %v337_v54, 0.0 }
 0x2a7   :  { %v343_v56 = vadd.f32 1e-05, %v339_v55 }
 0x2a9   :  { %492 = vrsqrt.f32 %v343_v56 }
 0x2af   :  { %v491_v58 = vpop.eup %490 }
 0x2b0   :  { %v346_v60 = vmul.f32 %v491_v58, %v340_v57 }
 0x2b2   :  { %v355_v63 = vmul.f32 %v404_v59, %v346_v60 }
 0x2b3   :  { %v493_v0 = vpop.eup %492 }
 0x2b4   :  { %v347_v1 = vmul.f32 %v493_v0, %v341_v62  ;;  %v364_v2 = vadd.f32 %v405_v61, %v355_v63 }
 0x2b6   :  { %v356_v3 = vmul.f32 %v404_v59, %v347_v1  ;;  %366 = vst [vmem:[#allocation9] sm:$0xff] %v364_v2 }
 0x2b8   :  { %v365_v4 = vadd.f32 %v405_v61, %v356_v3 }
 0x2ba   :  { %367 = vst [vmem:[#allocation9 + $0x8] sm:$0xff] %v365_v4 }
 0x2bb   :  { %571 = shalt.err (!%p568_p0)
}
 0x2bc   :  { %s572_s24 = scalar_lea.hbm %s717_s7, 256 }
 0x2bd   :  { %p573_p1 = scmp.ne.s32.totalorder %s717_s7, %s572_s24  ;;  %p576_p2 = scmp.lt.u32.totalorder %s572_s24, %s717_s7 }
 0x2bf   :  { %p578_p3 = pnand %p576_p2, %p573_p1 }
 0x2c1   :  { %581 = shalt.err (!%p578_p3)
}
 0x2c2   :  { %379 = dma.vmem_to_hbm [thread:$0]  %s374_s22, 256, %s717_s7, [#allocation5], %s592_s1, %s592_s1, %s593_s25  }
 0x2c3   :  { %586 = dma.done.wait [#allocation5], 256  }
 0x2c4   :  { %587 = vsyncadd [#allocation5], 4294967040 }
 0x2c5   :  { %383 = vsyncpa [#allocation4], 1 }
 0x2c6   :  { %384 = vsyncpa [#allocation7], 1 }
 0x2c7   :  { %385 = vsyncpa [#allocation5], 1 }

</bundles_post_ra>
